<compile_context>
chip_gen: v5e
topology: v5e:2x2
jax: 0.10.0
libtpu: 0.0.40
codegen_flags: <defaults>
</compile_context>

<pallas_src>
import jax
import jax.numpy as jnp
from jax.experimental import pallas as pl
from jax.experimental.pallas import tpu as pltpu


# ---------------------------------------------------------------------------
# Kernel
# ---------------------------------------------------------------------------
def _normalize_kernel(scale_ref, bias_ref, x_ref, o_ref):
    # scale_ref / bias_ref: (1, 1, 1, 1) f32 blocks (broadcast over the tile).
    # x_ref / o_ref:        (N_BLK, 1, R_TILE, L) blocks.
    x = x_ref[...].astype(jnp.float32)
    o_ref[...] = (x * scale_ref[...] + bias_ref[...]).astype(o_ref.dtype)


# ---------------------------------------------------------------------------
# Tiling helpers
# ---------------------------------------------------------------------------
def _target_block_bytes():
    """Per-buffer block-size target, derived from this chip's VMEM capacity."""
    vmem = None
    try:
        info = pltpu.get_tpu_info()
        vmem = getattr(info, "vmem_capacity_bytes", None)
    except Exception:
        vmem = None
    if not vmem:
        vmem = 64 << 20  # conservative (v7x per-TC VMEM)
    # ~vmem/16 per buffer keeps 2x-in + 2x-out double buffering well under
    # any generation's physical VMEM; clamp to the 2-6 MiB sweet spot.
    return int(min(6 << 20, max(2 << 20, vmem // 16)))


def _pick_tile(extent, quantum, max_tile):
    """Tile along one axis: full extent, or a multiple of `quantum`.

    Prefers exact divisors of `extent`; only accepts a ragged trailing block
    (handled by a cdiv grid) if every divisor would collapse the tile to less
    than a quarter of the target (a 128-wide-class tiny tile costs ~3x BW).
    """
    max_tile = max(quantum, min(extent, max_tile))
    if extent <= max_tile:
        return extent
    best_div = 0
    t = quantum
    while t <= max_tile:
        if extent % t == 0:
            best_div = t
        t += quantum
    if best_div * 4 >= max_tile:
        return best_div
    return max(quantum, (max_tile // quantum) * quantum)


def _padded_block_bytes(block_shape, itemsize):
    """VMEM footprint of a block after (8, 128) tile padding."""
    *lead, rows, lanes = block_shape
    rows_p = -(-rows // 8) * 8
    lanes_p = -(-lanes // 128) * 128
    n = 1
    for d in lead:
        n *= d
    return n * rows_p * lanes_p * itemsize


def _plan(N, C, HW, in_itemsize, out_itemsize, target_bytes):
    """Choose (L, R, r_tile, n_blk) for the (N, C, R, L) view."""
    if HW % 128 == 0:
        L = 128
        R = HW // 128
    else:
        # Fallback: full-extent last two dims are always legal block dims.
        L = HW
        R = 1
    itemsize = max(in_itemsize, out_itemsize)
    lanes_p = -(-L // 128) * 128

    # Rows per block so that one (single-image) slice is ~target_bytes.
    max_rows = max(8, target_bytes // (itemsize * lanes_p))
    r_tile = _pick_tile(R, 8, max_rows)

    # If a full plane fits, stack several batch images into one block.
    if r_tile == R:
        slice_bytes = _padded_block_bytes((1, 1, r_tile, L), itemsize)
        n_blk = _pick_tile(N, 1, max(1, target_bytes // slice_bytes))
    else:
        n_blk = 1

    # v7x has two TensorCores: make sure there are >= 2 grid steps to shard
    # when a single block would otherwise swallow everything.
    if N == 1 and C == 1 and pl.cdiv(R, r_tile) < 2 and R >= 16:
        r_tile = ((r_tile + 1) // 2 + 7) // 8 * 8

    return L, R, r_tile, n_blk


# ---------------------------------------------------------------------------
# Wrapper
# ---------------------------------------------------------------------------
def normalize_by_channel_mean_std(x, mean, std):
    """x: (N, C, H, W); mean, std: (C,). Returns (x - mean) / std per channel."""
    N, C, H, W = x.shape
    HW = H * W
    mean = jnp.asarray(mean)
    std = jnp.asarray(std)

    # Match PyTorch's type promotion (bf16 x + f32 stats -> f32 output; int
    # inputs promote to float). TPU has no f64, so clamp to f32.
    out_dtype = jnp.result_type(x.dtype, mean.dtype, std.dtype)
    if not jnp.issubdtype(out_dtype, jnp.floating) or out_dtype == jnp.float64:
        out_dtype = jnp.float32

    # Fold stats in f32: (x - mean) / std == x * (1/std) + (-mean/std).
    # (Not bit-exact with subtract-then-divide; ~1-2 ULP.)
    scale = (1.0 / std.astype(jnp.float32)).reshape(1, C, 1, 1)
    bias = (-mean.astype(jnp.float32)).reshape(1, C, 1, 1) * scale

    in_itemsize = jnp.dtype(x.dtype).itemsize
    out_itemsize = jnp.dtype(out_dtype).itemsize
    target_bytes = _target_block_bytes()
    L, R, r_tile, n_blk = _plan(N, C, HW, in_itemsize, out_itemsize, target_bytes)

    xv = x.reshape(N, C, R, L)  # zero-copy view of contiguous NCHW
    grid = (pl.cdiv(N, n_blk), C, pl.cdiv(R, r_tile))
    x_block = (n_blk, 1, r_tile, L)

    # Explicit scoped-VMEM budget sized from the *padded* block footprint
    # (2 input + 2 output buffers + scale/bias + margin), capped well under
    # v7x's 64 MiB physical VMEM.
    vmem_limit = (2 * _padded_block_bytes(x_block, in_itemsize)
                  + 2 * _padded_block_bytes(x_block, out_itemsize)
                  + 4 * (8 * 128 * 4)
                  + (2 << 20))
    vmem_limit = int(min(max(vmem_limit, 16 << 20), 48 << 20))

    out = pl.pallas_call(
        _normalize_kernel,
        out_shape=jax.ShapeDtypeStruct((N, C, R, L), out_dtype),
        grid_spec=pltpu.PrefetchScalarGridSpec(
            num_scalar_prefetch=0,
            grid=grid,
            in_specs=[
                pl.BlockSpec((1, 1, 1, 1), lambda n, c, r: (0, c, 0, 0)),   # scale
                pl.BlockSpec((1, 1, 1, 1), lambda n, c, r: (0, c, 0, 0)),   # bias
                pl.BlockSpec(x_block, lambda n, c, r: (n, c, r, 0)),        # x
            ],
            out_specs=pl.BlockSpec(x_block, lambda n, c, r: (n, c, r, 0)),
        ),
        compiler_params=pltpu.CompilerParams(
            dimension_semantics=("parallel", "parallel", "parallel"),
            vmem_limit_bytes=vmem_limit,
        ),
    )(scale, bias, xv)

    return out.reshape(N, C, H, W)


def normalize_ref(x, mean, std):
    # Pure-JAX reference matching the PyTorch normalize_fn semantics.
    return (x - mean[None, :, None, None]) / std[None, :, None, None]


# ---------------------------------------------------------------------------
# Self-test
# ---------------------------------------------------------------------------
if __name__ == "__main__":
    key = jax.random.PRNGKey(0)

    def run_case(shape, dtype, case_key):
        N, C, H, W = shape
        kx, km, ks = jax.random.split(case_key, 3)
        x = jax.random.normal(kx, shape, dtype=jnp.float32).astype(dtype)
        mean = jax.random.uniform(km, (C,), jnp.float32, minval=0.3, maxval=0.6)
        std = jax.random.uniform(ks, (C,), jnp.float32, minval=0.2, maxval=0.3)

        out = jax.block_until_ready(normalize_by_channel_mean_std(x, mean, std))
        expected = normalize_ref(x, mean, std)

        assert out.shape == shape
        assert out.dtype == expected.dtype, (out.dtype, expected.dtype)
        tol = 1e-5 if dtype == jnp.float32 else 2e-2
        assert jnp.allclose(out.astype(jnp.float32),
                            expected.astype(jnp.float32),
                            atol=tol, rtol=tol)

    # Primary small case from the module spec.
    run_case((2, 4, 16, 16), jnp.float32, jax.random.fold_in(key, 0))
    # 3-channel case (C < 8) exercising the lane/sublane-dense layout.
    run_case((4, 3, 32, 32), jnp.float32, jax.random.fold_in(key, 1))
    # bf16 input with f32 stats -> f32 output (PyTorch promotion).
    run_case((2, 3, 16, 24), jnp.bfloat16, jax.random.fold_in(key, 2))

    print("KERNEL_OK")
</pallas_src>

<mosaic_0001>
module attributes {stable_mosaic.version = 11 : i64} {
  func.func @_normalize_kernel(%arg0: i32, %arg1: i32, %arg2: i32, %arg3: memref<1x1x1x1xf32, #tpu.memory_space<vmem>>, %arg4: memref<1x1x1x1xf32, #tpu.memory_space<vmem>>, %arg5: memref<2x1x2x128xf32, #tpu.memory_space<vmem>>, %arg6: memref<2x1x2x128xf32, #tpu.memory_space<vmem>>) attributes {dimension_semantics = [#tpu.dimension_semantics<parallel>, #tpu.dimension_semantics<parallel>, #tpu.dimension_semantics<parallel>], iteration_bounds = array<i64: 1, 4, 1>, scalar_prefetch = 0 : i64, scratch_operands = 0 : i64, tpu.core_type = #tpu.core_type<tc>, window_params = [{transform_indices = @transform_0, window_bounds = array<i64: 1, 1, 1, 1>}, {transform_indices = @transform_1, window_bounds = array<i64: 1, 1, 1, 1>}, {transform_indices = @transform_2, window_bounds = array<i64: 2, 1, 2, 128>}, {transform_indices = @transform_3, window_bounds = array<i64: 2, 1, 2, 128>}]} {
    %c0 = arith.constant 0 : index
    %c0_0 = arith.constant 0 : index
    %c0_1 = arith.constant 0 : index
    %c0_2 = arith.constant 0 : index
    %0 = vector.load %arg5[%c0, %c0_0, %c0_1, %c0_2] : memref<2x1x2x128xf32, #tpu.memory_space<vmem>>, vector<2x1x2x128xf32>
    %c0_3 = arith.constant 0 : index
    %c0_4 = arith.constant 0 : index
    %c0_5 = arith.constant 0 : index
    %c0_6 = arith.constant 0 : index
    %1 = vector.load %arg3[%c0_3, %c0_4, %c0_5, %c0_6] : memref<1x1x1x1xf32, #tpu.memory_space<vmem>>, vector<1x1x1x1xf32>
    %2 = vector.broadcast %1 : vector<1x1x1x1xf32> to vector<2x1x2x128xf32>
    %3 = arith.mulf %0, %2 : vector<2x1x2x128xf32>
    %c0_7 = arith.constant 0 : index
    %c0_8 = arith.constant 0 : index
    %c0_9 = arith.constant 0 : index
    %c0_10 = arith.constant 0 : index
    %4 = vector.load %arg4[%c0_7, %c0_8, %c0_9, %c0_10] : memref<1x1x1x1xf32, #tpu.memory_space<vmem>>, vector<1x1x1x1xf32>
    %5 = vector.broadcast %4 : vector<1x1x1x1xf32> to vector<2x1x2x128xf32>
    %6 = arith.addf %3, %5 : vector<2x1x2x128xf32>
    %c0_11 = arith.constant 0 : index
    %c0_12 = arith.constant 0 : index
    %c0_13 = arith.constant 0 : index
    %c0_14 = arith.constant 0 : index
    %7 = vector.load %arg6[%c0_11, %c0_12, %c0_13, %c0_14] : memref<2x1x2x128xf32, #tpu.memory_space<vmem>>, vector<2x1x2x128xf32>
    tpu.vector_store %arg6[%c0_11, %c0_12, %c0_13, %c0_14], %6 {strides = array<i32>} : memref<2x1x2x128xf32, #tpu.memory_space<vmem>>, vector<2x1x2x128xf32>,
    return
  }
  func.func @transform_0(%arg0: i32, %arg1: i32, %arg2: i32) -> (i32, i32, i32, i32) {
    %c0_i32 = arith.constant 0 : i32
    %c0_i32_0 = arith.constant 0 : i32
    %c0_i32_1 = arith.constant 0 : i32
    %c0_i32_2 = arith.constant 0 : i32
    return %c0_i32, %arg1, %c0_i32_0, %c0_i32_1 : i32, i32, i32, i32
  }
  func.func @transform_1(%arg0: i32, %arg1: i32, %arg2: i32) -> (i32, i32, i32, i32) {
    %c0_i32 = arith.constant 0 : i32
    %c0_i32_0 = arith.constant 0 : i32
    %c0_i32_1 = arith.constant 0 : i32
    %c0_i32_2 = arith.constant 0 : i32
    return %c0_i32, %arg1, %c0_i32_0, %c0_i32_1 : i32, i32, i32, i32
  }
  func.func @transform_2(%arg0: i32, %arg1: i32, %arg2: i32) -> (i32, i32, i32, i32) {
    %c0_i32 = arith.constant 0 : i32
    %c0_i32_0 = arith.constant 0 : i32
    return %arg0, %arg1, %arg2, %c0_i32 : i32, i32, i32, i32
  }
  func.func @transform_3(%arg0: i32, %arg1: i32, %arg2: i32) -> (i32, i32, i32, i32) {
    %c0_i32 = arith.constant 0 : i32
    %c0_i32_0 = arith.constant 0 : i32
    return %arg0, %arg1, %arg2, %c0_i32 : i32, i32, i32, i32
  }
}

</mosaic_0001>

<bundles_post_ra>
// kernel: tpu_custom_call.1
= control target key start
LH: loop header
LB: loop body
LE: loop exit
PB: predicated region body
PF: predicated region fallthrough
CT: control target
= control target key end

     0   :  { %8 = vsyncpa [#allocation3], 0  ;;  %s752_s0 = inlined_call_operand.vmem [shape: f32[1,4,1,1], index: 0, kind: input, shape index: {}]   ;;  %s753_s1 = inlined_call_operand.vmem [shape: f32[1,4,1,1], index: 1, kind: input, shape index: {}]   ;;  %s754_s2 = inlined_call_operand.hbm [shape: f32[2,4,2,128], index: 2, kind: input, shape index: {}]   ;;  %s755_s3 = inlined_call_operand.hbm [shape: f32[2,4,2,128], index: 3, kind: output, shape index: {}]  }
   0x1   :  { %10 = vsyncpa [#allocation3 + $0x1], 0 }
   0x2   :  { %11 = vsyncpa [#allocation4], 0 }
   0x3   :  { %13 = vsyncpa [#allocation4 + $0x1], 0  ;;  %s626_s12 = smov 0   ;;  %s628_s13 = smov 0  }
   0x4   :  { %s630_s14 = smov 0   ;;  %s632_s15 = smov 0  }
   0x5   :  { %s634_s16 = smov 0   ;;  %s636_s17 = smov 0  }
   0x6 LB: > { %s400_s18 = sadd.s32 4294967295, %s597_s17   ;;  %s401_s19 = sadd.s32 4294967294, %s597_s17   ;;  %s597_s17 = sphi %s636_s17, %s19_s17   ;;  %s593_s16 = sphi %s634_s16, %s764_s16   ;;  %s589_s15 = sphi %s632_s15, %s763_s15   ;;  %s585_s14 = sphi %s630_s14, %s762_s14   ;;  %s581_s13 = sphi %s628_s13, %s761_s13   ;;  %s577_s12 = sphi %s626_s12, %s760_s12  }
   0x7   : > { %s34_s20 = sadd.s32 1, %s593_s16  ;;  %s101_s21 = sadd.s32 1, %s585_s14 }
   0x8   : > { %p36_p0 = scmp.ge.s32.totalorder %s34_s20, 4  ;;  %p108_p1 = scmp.ne.s32.totalorder %s585_s14, %s581_s13 }
   0x9   : > { %p109_p2 = scmp.eq.s32.totalorder %s597_s17, 0  ;;  %p114_p3 = scmp.ne.s32.totalorder %s581_s13, %s577_s12 }
   0xa   : > { %s766_s20 = smov (%p36_p0, %s34_s20), 0  ;;  %p115_p5 = scmp.eq.s32.totalorder %s400_s18, 0 }
   0xb   : > { %p667_p4 = por %p109_p2, %p108_p1  ;;  %s95_s23 = ssub.s32 %s593_s16, %s766_s20 }
   0xc   : > { %p142_p6 = scmp.eq.s32.totalorder %s400_s18, 3  ;;  %p99_p7 = scmp.eq.s32.totalorder %s95_s23, 0 }
   0xd   : > { %p673_p8 = por %p115_p5, %p114_p3  ;;  %p148_p10 = scmp.eq.s32.totalorder %s401_s19, 3 }
   0xe   : > { %p677_p9 = por %p142_p6, %p108_p1  ;;  %p425_p12 = scmp.lt.s32.totalorder %s597_s17, 4 }
   0xf   : > { %s682_s26 = scalar_select %p99_p7, %s585_s14, %s101_s21  }
  0x10   : > { %p684_p11 = por %p148_p10, %p114_p3  ;;  %s180_s28 = sand.u32 1, %s585_s14  }
  0x11   : > { %s404_s29 = sshll.u32 %s180_s28, 2  ;;  %s405_s30 = sshll.u32 %s593_s16, 1 }
  0x12   : > { %s192_s6 = scalar_lea.hbm %s754_s2, %s405_s30  ;;  %s184_s7 = scalar_lea.vmem [#allocation2], %s404_s29 }
  0x13   : > { %s195_s8 = sshll.u32 %s184_s7, 4  ;;  %s193_s9 = sshll.u32 %s192_s6, 4  ;;  %s196_s8 = int_to_ptr.vmem [resolvable:$true] %s195_s8  ;;  %s194_s9 = int_to_ptr.hbm [resolvable:$true] %s193_s9 }
  0x14   : > { %p418_p13 = pnand %p425_p12, %p667_p4  ;;  %s181_s10 = scalar_lea.sflag [#allocation3], %s180_s28 }
  0x15   : > { %s599_s11 = smov 128   ;;  %s600_s18 = smov 32  }
  0x16   : > { %s601_s19 = smov 2   ;;  %p406_p0 = scmp.ge.s32.totalorder %s597_s17, 1 }
  0x17   : > { %420 = dma.hbm_to_vmem [thread:$0]  (!%p418_p13), %s194_s9, 64, %s196_s8, %s181_s10, %s599_s11, %s600_s18, %s601_s19  }
  0x18   : > { %p203_p1 = scmp.lt.s32.totalorder %s597_s17, 5 }
  0x1a   : > { %p204_p2 = pnand %p406_p0, %p203_p1 }
  0x1b   : > { %s699_s21 = sand.u32 (!%p204_p2), 1, %s581_s13  }
  0x1c   : > { %207 = sbr.rel (%p204_p2) target bundleno = 171 (0xab), region = 32  ;;  %s407_s23 = sshll.u32 (!%p204_p2), %s699_s21, 2 }
  0x1d   : > { %s210_s29 = scalar_lea.sflag (!%p204_p2), [#allocation3], %s699_s21  ;;  %s213_s30 = scalar_lea.vmem (!%p204_p2), [#allocation2], %s407_s23 }
  0x21   : > { %568 = dma.done.wait (%p673_p8), %s210_s29, 64  }
  0x22   : > { %570 = vsyncadd (%p673_p8), %s210_s29, 4294967232  ;;  %p243_p3 = scmp.lt.s32.totalorder %s589_s15, 3  ;;  %v602_v0 = vmov 0   ;;  %s410_s24 = sshll.u32 %s589_s15, 1  ;;  %v251_v4 = vld [vmem:[%s213_s30] sm:$0x3] }
  0x23   : > { %482 = vset.pattern.permute.xlu0 %v602_v0  ;;  %s288_s11 = scalar_lea.hbm %s755_s3, %s410_s24  ;;  %v252_v5 = vld [vmem:[%s213_s30 + $0x2] sm:$0x3]  ;;  %s242_s18 = scalar_lea.vmem [#allocation5], %s407_s23 }
  0x24   : > { %s244_s22 = scalar_select %p243_p3, %s589_s15, 3 }
  0x25   : > { %s289_s19 = sshll.u32 %s242_s18, 4  ;;  %s291_s29 = sshll.u32 %s288_s11, 4  ;;  %s290_s19 = int_to_ptr.vmem [resolvable:$true] %s289_s19  ;;  %s292_s29 = int_to_ptr.hbm [resolvable:$true] %s291_s29 }
  0x26   : > { %s245_s5 = scalar_lea.vmem %s752_s0, %s244_s22  ;;  %s248_s8 = scalar_lea.vmem %s753_s1, %s244_s22 }
  0x27   : > { %v483_v1 = vld [vmem:[%s245_s5] ss:$0 sm:$0xff]  ;;  %s274_s15 = scalar_lea.sflag [#allocation4], %s699_s21  ;;  %s529_s22 = sshra.s32 %s292_s29, 4  ;;  %s530_s22 = int_to_ptr.hbm [resolvable:$true] %s529_s22 }
  0x28   : > { %257 = vperm.xlu0 %482, %v483_v1   ;;  %v484_v2 = vld [vmem:[%s248_s8] ss:$0 sm:$0xff]  ;;  %s531_s28 = scalar_lea.hbm %s530_s22, 4  ;;  %s535_s4 = scalar_lea.hbm %s755_s3, 16 }
  0x29   : > { %p532_p4 = scmp.ne.s32.totalorder %s530_s22, %s531_s28  ;;  %p536_p7 = scmp.lt.s32.totalorder %s530_s22, %s755_s3 }
  0x2a   : > { %p537_p8 = scmp.lt.s32.totalorder %s535_s4, %s531_s28 }
  0x2b   : > { %p533_p5 = pnand %p532_p4, %p677_p9 }
  0x2c   : > { %p538_p10 = por %p537_p8, %p536_p7 }
  0x2d   : > { %p534_p6 = pneg %p533_p5 }
  0x2f   : > { %p539_p12 = pnand %p538_p10, %p534_p6 }
  0x30   : > { %266 = vperm.xlu0 %482, %v484_v2  }
  0x9a   : > { %v258_v3 = vpop.permute.xlu0 %257 }
  0x9b   : > { %v260_v6 = vmul.f32 %v258_v3, %v251_v4  ;;  %v261_v7 = vmul.f32 %v258_v3, %v252_v5 }
  0xa2   : > { %v267_v8 = vpop.permute.xlu0 %266 }
  0xa3   : > { %v269_v9 = vadd.f32 %v267_v8, %v260_v6  ;;  %v270_v10 = vadd.f32 %v267_v8, %v261_v7 }
  0xa5   : > { %271 = vst [vmem:[%s242_s18] sm:$0x3] %v269_v9 }
  0xa6   : > { %272 = vst [vmem:[%s242_s18 + $0x2] sm:$0x3] %v270_v10 }
  0xa7   : > { %542 = shalt.err (!%p539_p12)
}
  0xa8   : > { %s603_s21 = smov 32   ;;  %s604_s7 = smov 128  }
  0xa9   : > { %s605_s8 = smov 2  }
  0xaa   : > { %415 = dma.vmem_to_hbm [thread:$0]  (%p677_p9), %s290_s19, 64, %s292_s29, %s274_s15, %s603_s21, %s604_s7, %s605_s8  }
  0xab PF: > { %p426_p13 = scmp.ge.s32.totalorder %s597_s17, 2  ;;  %s306_s24 = sand.u32 1, %s577_s12  }
  0xac   : > { %s307_s9 = scalar_lea.sflag [#allocation4], %s306_s24 }
  0xad   : > { %p422_p0 = pnand %p426_p13, %p684_p11 }
  0xaf   : > { %p423_p1 = pneg %p422_p0 }
  0xb1   : > { %572 = dma.done.wait (%p423_p1), %s307_s9, 64  }
  0xb2   : > { %574 = vsyncadd (%p423_p1), %s307_s9, 4294967232  ;;  %s19_s17 = sadd.s32 1, %s597_s17   ;;  %s760_s12 = smov %s581_s13 }
  0xb3   : > { %p16_p2 = scmp.ge.s32.totalorder %s19_s17, 6   ;;  %s761_s13 = smov %s585_s14 }
  0xb4   : > { %s762_s14 = smov %s682_s26  ;;  %s763_s15 = smov %s593_s16 }
  0xb5   : > { %s764_s16 = smov %s766_s20  ;;  %18 = sbr.rel (!%p16_p2) target bundleno = 6 (0x6), region = 83 }
  0xba   :  { %313 = vsyncpa [#allocation3], 1 }
  0xbb   :  { %315 = vsyncpa [#allocation3 + $0x1], 1 }
  0xbc   :  { %316 = vsyncpa [#allocation4], 1 }
  0xbd   :  { %318 = vsyncpa [#allocation4 + $0x1], 1 }

</bundles_post_ra>
